<compile_context>
chip_gen: v7x
topology: tpu7x:2x2x1
jax: 0.10.0
libtpu: 0.0.40
codegen_flags: <defaults>
</compile_context>

<pallas_src>
import jax
import jax.numpy as jnp
import numpy as np
from jax.experimental import pallas as pl
from jax.experimental.pallas import tpu as pltpu


# ----------------------------- kernels --------------------------------------

def _shift_kernel(x_ref, shift_ref, out_ref):
    # x_ref: (tm, tn)   shift_ref: (tm, 1)   out_ref: (tm, tn)
    out_ref[...] = (x_ref[...] + shift_ref[...]).astype(out_ref.dtype)


def _affine_kernel(x_ref, gb_ref, out_ref):
    # x_ref: (tm, tn)   gb_ref: (tm, 2) with [:,0]=1+gamma, [:,1]=beta
    gb = gb_ref[...]
    out_ref[...] = (gb[:, 0:1] * x_ref[...] + gb[:, 1:2]).astype(out_ref.dtype)


# ----------------------------- tiling ----------------------------------------

_TILE_BYTES = 8 * 1024 * 1024      # ~8 MiB per x/out tile (v7x-safe)
_VMEM_LIMIT = 40 * 1024 * 1024     # explicit scoped-VMEM budget


def _pick_tiles(M, N, itemsize, tile_bytes=_TILE_BYTES):
    """Pick (tm, tn) for a [M, N] array. Prefers full rows (contiguous DMA);
    tiles are multiples of the (sublane, 128) unit or equal to the full dim,
    and never exceed `tile_bytes`. Ragged grid edges are handled by Pallas."""
    sub = max(8, 32 // max(itemsize, 1))   # 8 f32, 16 bf16, 32 int8/fp8
    lane = 128
    row_bytes = max(N * itemsize, 1)

    # Case 1: whole array fits in one tile.
    if M * row_bytes <= tile_bytes:
        return M, N
    # Case 2: full rows fit -> 1-D tiling over M, fully contiguous DMAs.
    rows_cap = tile_bytes // row_bytes
    if rows_cap >= sub:
        return (rows_cap // sub) * sub, N
    # Case 3: a single sublane-unit of rows exceeds the budget; tile columns.
    tm = min(M, sub)
    cols_cap = tile_bytes // max(tm * itemsize, 1)
    tn = min(N, max(lane, (cols_cap // lane) * lane))
    return tm, tn


# ----------------------------- wrapper ---------------------------------------

def feature_wise_affine_pallas(x, noise_embed, weight, bias, *,
                               use_affine_level=False):
    """x: [B, C, H, W]; noise_embed: [B, Cin];
    weight: [C*(1+affine), Cin]; bias: [C*(1+affine)]  (PyTorch Linear layout).
    Returns [B, C, H, W] with x.dtype."""
    B, C, H, W = x.shape
    Cin = noise_embed.shape[1]
    Ct = weight.shape[0]
    assert Ct == C * (2 if use_affine_level else 1)
    assert weight.shape == (Ct, Cin) and bias.shape == (Ct,)

    # Tiny Linear: plain XLA matmul in the wrapper (MXU utilization in a
    # dedicated Pallas call would be ~0; not worth the dispatch).
    lin = jnp.dot(noise_embed.astype(jnp.float32),
                  jnp.transpose(weight).astype(jnp.float32),
                  preferred_element_type=jnp.float32) + bias.astype(jnp.float32)

    # Bandwidth-dominant broadcast, lane-dense over H*W.
    M, N = B * C, H * W
    x2d = x.reshape(M, N)                    # pure view of NCHW order, no copy
    itemsize = jnp.dtype(x.dtype).itemsize
    tm, tn = _pick_tiles(M, N, itemsize)

    if tn == N:                              # full-row tiles -> 1-D grid over M
        grid = (pl.cdiv(M, tm),)
        x_map = lambda i: (i, 0)
        col_map = lambda i: (i, 0)
    else:                                    # rows too long -> 2-D grid
        grid = (pl.cdiv(M, tm), pl.cdiv(N, tn))
        x_map = lambda i, j: (i, j)
        col_map = lambda i, j: (i, 0)

    x_spec = pl.BlockSpec((tm, tn), x_map)
    out_spec = pl.BlockSpec((tm, tn), x_map)
    cparams = pltpu.CompilerParams(
        dimension_semantics=("parallel",) * len(grid),
        vmem_limit_bytes=_VMEM_LIMIT)

    if use_affine_level:
        # chunk(2, dim=1): gamma = first C channels, beta = last C channels.
        gamma1 = (lin[:, :C] + 1.0).reshape(M)       # pre-add the 1.0 here
        beta = lin[:, C:].reshape(M)
        gb = jnp.stack([gamma1, beta], axis=1)       # (M, 2), row m = b*C + c
        out2d = pl.pallas_call(
            _affine_kernel,
            out_shape=jax.ShapeDtypeStruct((M, N), x.dtype),
            grid=grid,
            in_specs=[x_spec, pl.BlockSpec((tm, 2), col_map)],
            out_specs=out_spec,
            compiler_params=cparams,
        )(x2d, gb)
    else:
        shift = lin.reshape(M, 1)                    # (M, 1), row m = b*C + c
        out2d = pl.pallas_call(
            _shift_kernel,
            out_shape=jax.ShapeDtypeStruct((M, N), x.dtype),
            grid=grid,
            in_specs=[x_spec, pl.BlockSpec((tm, 1), col_map)],
            out_specs=out_spec,
            compiler_params=cparams,
        )(x2d, shift)

    return out2d.reshape(B, C, H, W)


# ----------------------------- test harness ----------------------------------

if __name__ == "__main__":
    key = jax.random.PRNGKey(0)
    B, C, H, W = 2, 4, 16, 16
    noise_dim = 32

    kx, kn, kw1, kb1, kw2, kb2 = jax.random.split(key, 6)
    x = jax.random.normal(kx, (B, C, H, W), dtype=jnp.float32)
    noise_embed = jax.random.normal(kn, (B, noise_dim), dtype=jnp.float32)

    bound = 1.0 / np.sqrt(noise_dim)
    # use_affine_level=False: Linear(noise_dim -> C)
    w_shift = jax.random.uniform(kw1, (C, noise_dim), minval=-bound,
                                 maxval=bound, dtype=jnp.float32)
    b_shift = jax.random.uniform(kb1, (C,), minval=-bound, maxval=bound,
                                 dtype=jnp.float32)
    # use_affine_level=True: Linear(noise_dim -> 2C)
    w_aff = jax.random.uniform(kw2, (2 * C, noise_dim), minval=-bound,
                               maxval=bound, dtype=jnp.float32)
    b_aff = jax.random.uniform(kb2, (2 * C,), minval=-bound, maxval=bound,
                               dtype=jnp.float32)

    def reference(x, noise, weight, bias, use_affine_level):
        lin = jnp.dot(noise.astype(jnp.float32), weight.T.astype(jnp.float32),
                      preferred_element_type=jnp.float32) + bias
        if use_affine_level:
            gamma = lin[:, :C].reshape(B, C, 1, 1)
            beta = lin[:, C:].reshape(B, C, 1, 1)
            return (1.0 + gamma) * x + beta
        return x + lin.reshape(B, C, 1, 1)

    # default path (use_affine_level=False)
    y0 = feature_wise_affine_pallas(x, noise_embed, w_shift, b_shift,
                                    use_affine_level=False)
    y0 = jax.block_until_ready(y0)
    y0_ref = reference(x, noise_embed, w_shift, b_shift, False)
    assert y0.shape == (B, C, H, W), y0.shape
    assert np.allclose(np.asarray(y0), np.asarray(y0_ref),
                       atol=1e-4, rtol=1e-4)

    # affine path (use_affine_level=True)
    y1 = feature_wise_affine_pallas(x, noise_embed, w_aff, b_aff,
                                    use_affine_level=True)
    y1 = jax.block_until_ready(y1)
    y1_ref = reference(x, noise_embed, w_aff, b_aff, True)
    assert y1.shape == (B, C, H, W), y1.shape
    assert np.allclose(np.asarray(y1), np.asarray(y1_ref),
                       atol=1e-4, rtol=1e-4)

    print("KERNEL_OK")
</pallas_src>

<mosaic_0001>
module attributes {stable_mosaic.version = 11 : i64} {
  func.func @_shift_kernel(%arg0: i32, %arg1: memref<8x256xf32, #tpu.memory_space<vmem>>, %arg2: memref<8x1xf32, #tpu.memory_space<vmem>>, %arg3: memref<8x256xf32, #tpu.memory_space<vmem>>) attributes {dimension_semantics = [#tpu.dimension_semantics<parallel>], iteration_bounds = array<i64: 1>, scalar_prefetch = 0 : i64, scratch_operands = 0 : i64, tpu.core_type = #tpu.core_type<tc>, window_params = [{transform_indices = @transform_0, window_bounds = array<i64: 8, 256>}, {transform_indices = @transform_1, window_bounds = array<i64: 8, 1>}, {transform_indices = @transform_2, window_bounds = array<i64: 8, 256>}]} {
    %c0 = arith.constant 0 : index
    %c0_0 = arith.constant 0 : index
    %0 = vector.load %arg1[%c0, %c0_0] : memref<8x256xf32, #tpu.memory_space<vmem>>, vector<8x256xf32>
    %c0_1 = arith.constant 0 : index
    %c0_2 = arith.constant 0 : index
    %1 = vector.load %arg2[%c0_1, %c0_2] : memref<8x1xf32, #tpu.memory_space<vmem>>, vector<8x1xf32>
    %2 = vector.broadcast %1 : vector<8x1xf32> to vector<8x256xf32>
    %3 = arith.addf %0, %2 : vector<8x256xf32>
    %c0_3 = arith.constant 0 : index
    %c0_4 = arith.constant 0 : index
    %4 = vector.load %arg3[%c0_3, %c0_4] : memref<8x256xf32, #tpu.memory_space<vmem>>, vector<8x256xf32>
    tpu.vector_store %arg3[%c0_3, %c0_4], %3 {strides = array<i32>} : memref<8x256xf32, #tpu.memory_space<vmem>>, vector<8x256xf32>,
    return
  }
  func.func @transform_0(%arg0: i32) -> (i32, i32) {
    %c0_i32 = arith.constant 0 : i32
    %c0_i32_0 = arith.constant 0 : i32
    return %arg0, %c0_i32 : i32, i32
  }
  func.func @transform_1(%arg0: i32) -> (i32, i32) {
    %c0_i32 = arith.constant 0 : i32
    %c0_i32_0 = arith.constant 0 : i32
    return %arg0, %c0_i32 : i32, i32
  }
  func.func @transform_2(%arg0: i32) -> (i32, i32) {
    %c0_i32 = arith.constant 0 : i32
    %c0_i32_0 = arith.constant 0 : i32
    return %arg0, %c0_i32 : i32, i32
  }
}

</mosaic_0001>

<bundles_post_ra>
// kernel: tpu_custom_call.1
= control target key start
LH: loop header
LB: loop body
LE: loop exit
PB: predicated region body
PF: predicated region fallthrough
CT: control target
= control target key end

     0   :  { %7 = vsyncpa [#allocation3], 0  ;;  %s148_s0 = inlined_call_operand.hbm [shape: f32[8,256], index: 0, kind: input, shape index: {}]   ;;  %s149_s1 = inlined_call_operand.vmem [shape: f32[8,1], index: 1, kind: input, shape index: {}]   ;;  %s150_s2 = inlined_call_operand.hbm [shape: f32[8,256], index: 2, kind: output, shape index: {}]  }
   0x1   :  { %8 = vsyncpa [#allocation4], 0  ;;  %s103_s9 = smov [#allocation2]   ;;  %s55_s13 = scalar_lea.hbm %s148_s0, 256 }
   0x2   :  { %s15_s10 = sshll.u32 %s103_s9, 4  ;;  %p56_p0 = scmp.ne.s32.totalorder %s148_s0, %s55_s13  ;;  %s16_s10 = int_to_ptr.vmem [resolvable:$true] %s15_s10 }
   0x3   :  { %p59_p1 = scmp.lt.u32.totalorder %s55_s13, %s148_s0 }
   0x5   :  { %p61_p2 = pnand %p59_p1, %p56_p0 }
   0x7   :  { %64 = shalt.err (!%p61_p2)
}
   0x8   :  { %s65_s18 = scalar_lea.vmem %s16_s10, 256  ;;  %p70_p4 = scmp.lt.s32.totalorder %s16_s10, %s16_s10 }
   0x9   :  { %p66_p3 = scmp.ne.s32.totalorder %s16_s10, %s65_s18  ;;  %p71_p5 = scmp.lt.s32.totalorder %s65_s18, %s65_s18 }
   0xb   :  { %p72_p6 = por %p71_p5, %p70_p4 }
   0xd   :  { %p73_p7 = pnand %p72_p6, %p66_p3 }
   0xf   :  { %76 = shalt.err (!%p73_p7)
}
  0x10   :  { %18 = dma.hbm_to_vmem [thread:$0]  %s148_s0, 256, %s16_s10, [#allocation3]  }
  0x11   :  { %99 = dma.done.wait [#allocation3], 256  }
  0x12   :  { %100 = vsyncadd [#allocation3], 4294967040  ;;  %v104_v0 = vmov 0   ;;  %v26_v1 = vld [vmem:[%s149_s1] sm:$0xff]  ;;  %v25_v3 = vld [vmem:[#allocation2 + $0x8] sm:$0xff]  ;;  %s105_s23 = smov [#allocation5]  }
  0x13   :  { %54 = vset.pattern.permute.xlu0 %v104_v0  ;;  %v24_v2 = vld [vmem:[#allocation2] sm:$0xff]  ;;  %s42_s24 = sshll.u32 %s105_s23, 4  ;;  %s43_s24 = int_to_ptr.vmem [resolvable:$true] %s42_s24 }
  0x14   :  { %29 = vperm.xlu0 %54, %v26_v1   ;;  %s77_s0 = scalar_lea.vmem %s43_s24, 256  ;;  %p82_p9 = scmp.lt.s32.totalorder %s43_s24, %s43_s24 }
  0x15   :  { %p78_p8 = scmp.ne.s32.totalorder %s43_s24, %s77_s0  ;;  %p83_p10 = scmp.lt.s32.totalorder %s77_s0, %s77_s0 }
  0x17   :  { %p84_p11 = por %p83_p10, %p82_p9 }
  0x19   :  { %p85_p12 = pnand %p84_p11, %p78_p8 }
  0x93   :  { %v30_v4 = vpop.permute.xlu0 %29 }
  0x94   :  { %v32_v5 = vadd.f32 %v30_v4, %v24_v2  ;;  %v33_v6 = vadd.f32 %v30_v4, %v25_v3 }
  0x96   :  { %34 = vst [vmem:[#allocation5] sm:$0xff] %v32_v5  ;;  %35 = vst [vmem:[#allocation5 + $0x8] sm:$0xff] %v33_v6 }
  0x97   :  { %88 = shalt.err (!%p85_p12)
}
  0x98   :  { %s89_s26 = scalar_lea.hbm %s150_s2, 256 }
  0x99   :  { %p90_p13 = scmp.ne.s32.totalorder %s150_s2, %s89_s26  ;;  %p93_p0 = scmp.lt.u32.totalorder %s89_s26, %s150_s2 }
  0x9b   :  { %p95_p1 = pnand %p93_p0, %p90_p13 }
  0x9d   :  { %98 = shalt.err (!%p95_p1)
}
  0x9e   :  { %45 = dma.vmem_to_hbm [thread:$0]  %s43_s24, 256, %s150_s2, [#allocation4]  }
  0x9f   :  { %101 = dma.done.wait [#allocation4], 256  }
  0xa0   :  { %102 = vsyncadd [#allocation4], 4294967040 }
  0xa1   :  { %49 = vsyncpa [#allocation3], 1 }
  0xa2   :  { %50 = vsyncpa [#allocation4], 1 }

</bundles_post_ra>
